<compile_context>
chip_gen: v6e
topology: v6e:2x2x1
jax: 0.10.0
libtpu: 0.0.40
codegen_flags: <defaults>
</compile_context>

<pallas_src>
import functools

import jax
import jax.numpy as jnp
from jax.experimental import pallas as pl
from jax.experimental.pallas import tpu as pltpu


def _round_up(x, m):
    return (x + m - 1) // m * m


def conv_prelu_kernel(col_ref, w_ref, s_ref, b_ref, a_ref, o_ref):
    """One grid step: (TM, Kpad) x (Kpad, Cpad) MXU matmul + folded-BN + PReLU epilogue.

    col_ref: (TM, Kpad)   lane-dense im2col rows (built wrapper-side), compute dtype
    w_ref  : (Kpad, Cpad) im2col conv weights, K and Cout zero-padded, compute dtype
    s_ref  : (1, Cpad)    folded BN scale  = gamma / sqrt(var + eps)            (f32)
    b_ref  : (1, Cpad)    folded BN bias   = beta + (conv_bias - mean) * scale  (f32)
    a_ref  : (1,)         PReLU alpha (single shared parameter), SMEM scalar
    o_ref  : (TM, Cpad)   lane-dense output slab
    """
    # Single MXU matmul with f32 accumulation (operands may be bf16).
    acc = jnp.dot(col_ref[...], w_ref[...],
                  preferred_element_type=jnp.float32)          # (TM, Cpad) f32

    # Folded BatchNorm (eval mode) + PReLU — fully lane-dense (Cpad = 128).
    y = acc * s_ref[...] + b_ref[...]
    alpha = a_ref[0]
    y = jnp.where(y > 0, y, alpha * y)
    o_ref[...] = y.astype(o_ref.dtype)


def conv_prelu_forward(x_nchw, weight_oihw, conv_bias, gamma, beta,
                       running_mean, running_var, prelu_alpha, eps=1e-5,
                       compute_dtype=jnp.bfloat16, tm=256):
    """Forward pass matching PyTorch conv_prelu (BN in eval mode, stats folded)."""
    N, Cin, H, W = x_nchw.shape
    Cout = weight_oihw.shape[0]
    K = 9 * Cin
    Kpad = _round_up(max(K, 128), 128)      # lane-dense contraction padding
    Cpad = _round_up(max(Cout, 128), 128)   # lane-dense output-channel padding
    M = N * H * W
    TM = min(tm, _round_up(M, 8))           # rows per grid step (multiple of 8)
    Mpad = _round_up(M, TM)

    # ---- XLA-side im2col (pad / slice / concat / reshape fuse under jit) ----
    # NCHW -> NHWC (channels innermost) + zero pad for 3x3 / padding=1.
    x_nhwc = jnp.transpose(x_nchw, (0, 2, 3, 1)).astype(jnp.float32)
    x_sp = jnp.pad(x_nhwc, ((0, 0), (1, 1), (1, 1), (0, 0)))
    # col[(n,h,w), (kh*3+kw)*Cin + cin] = x_pad[n, h+kh, w+kw, cin]
    patches = [x_sp[:, kh:kh + H, kw:kw + W, :]
               for kh in range(3) for kw in range(3)]
    col = jnp.concatenate(patches, axis=-1).reshape(M, K)
    col = jnp.pad(col, ((0, Mpad - M), (0, Kpad - K))).astype(compute_dtype)

    # OIHW -> (kh, kw, Cin, Cout) -> (9*Cin, Cout), zero-pad K -> Kpad, Cout -> Cpad.
    w_col = jnp.transpose(weight_oihw, (2, 3, 1, 0)).reshape(K, Cout)
    w_col = jnp.pad(w_col, ((0, Kpad - K), (0, Cpad - Cout))).astype(compute_dtype)

    # Fold BatchNorm (eval mode, running stats) + conv bias into scale/bias (f32 epilogue).
    scale = gamma / jnp.sqrt(running_var + eps)                      # (Cout,)
    bias = beta + (conv_bias - running_mean) * scale                 # (Cout,)
    scale_p = jnp.pad(scale.astype(jnp.float32), (0, Cpad - Cout)).reshape(1, Cpad)
    bias_p = jnp.pad(bias.astype(jnp.float32), (0, Cpad - Cout)).reshape(1, Cpad)
    alpha1 = jnp.asarray(prelu_alpha, jnp.float32).reshape(1)

    out2d = pl.pallas_call(
        conv_prelu_kernel,
        out_shape=jax.ShapeDtypeStruct((Mpad, Cpad), x_nchw.dtype),
        grid_spec=pltpu.PrefetchScalarGridSpec(
            num_scalar_prefetch=0,
            grid=(Mpad // TM,),
            in_specs=[
                pl.BlockSpec((TM, Kpad), lambda i: (i, 0)),           # im2col rows
                pl.BlockSpec((Kpad, Cpad), lambda i: (0, 0)),         # weights
                pl.BlockSpec((1, Cpad), lambda i: (0, 0)),            # BN scale
                pl.BlockSpec((1, Cpad), lambda i: (0, 0)),            # BN bias
                pl.BlockSpec(memory_space=pltpu.MemorySpace.SMEM),    # PReLU alpha
            ],
            out_specs=pl.BlockSpec((TM, Cpad), lambda i: (i, 0)),
        ),
        compiler_params=pltpu.CompilerParams(
            dimension_semantics=("parallel",),       # v7x: split M over both TCs
            vmem_limit_bytes=32 * 1024 * 1024),
    )(col, w_col, scale_p, bias_p, alpha1)

    # (Mpad, Cpad) -> (N, H, W, Cout) -> NCHW to match the PyTorch output convention.
    # Under jit the slice + transpose fuse with downstream consumers.
    out_nhwc = out2d[:M, :Cout].reshape(N, H, W, Cout)
    return jnp.transpose(out_nhwc, (0, 3, 1, 2))


def reference_forward(x_nchw, weight_oihw, conv_bias, gamma, beta,
                      running_mean, running_var, prelu_alpha, eps=1e-5):
    """Pure-JAX reference (conv -> BN(eval) -> PReLU) for correctness check."""
    y = jax.lax.conv_general_dilated(
        x_nchw, weight_oihw, window_strides=(1, 1), padding=((1, 1), (1, 1)),
        dimension_numbers=("NCHW", "OIHW", "NCHW"))
    y = y + conv_bias.reshape(1, -1, 1, 1)
    scale = (gamma / jnp.sqrt(running_var + eps)).reshape(1, -1, 1, 1)
    shift = (beta - running_mean * gamma / jnp.sqrt(running_var + eps)).reshape(1, -1, 1, 1)
    y = y * scale + shift
    return jnp.where(y > 0, y, prelu_alpha * y)


if __name__ == "__main__":
    # Small shapes consistent with the module: x (N=2, in_ch=4, H=W=16), out_ch=8.
    N, in_ch, out_ch, H, W = 2, 4, 8, 16, 16

    key = jax.random.PRNGKey(0)
    kx, kw, kb, kg, kbeta, kmean, kvar = jax.random.split(key, 7)

    x = jax.random.normal(kx, (N, in_ch, H, W), dtype=jnp.float32)

    # Deterministic parameter init (shapes from nn.Conv2d / nn.BatchNorm2d / nn.PReLU).
    weight = jax.random.normal(kw, (out_ch, in_ch, 3, 3), dtype=jnp.float32) * 0.1
    conv_bias = jax.random.normal(kb, (out_ch,), dtype=jnp.float32) * 0.05
    gamma = 1.0 + 0.1 * jax.random.normal(kg, (out_ch,), dtype=jnp.float32)
    beta = 0.05 * jax.random.normal(kbeta, (out_ch,), dtype=jnp.float32)
    running_mean = 0.1 * jax.random.normal(kmean, (out_ch,), dtype=jnp.float32)
    running_var = 1.0 + 0.1 * jnp.abs(jax.random.normal(kvar, (out_ch,), dtype=jnp.float32))
    prelu_alpha = jnp.float32(0.25)  # nn.PReLU(num_parameters=1, init=0.25)

    # TODO(synk): BatchNorm is implemented in eval mode (running stats folded);
    # training-mode batch statistics are not computed in-kernel.

    args = (x, weight, conv_bias, gamma, beta, running_mean, running_var, prelu_alpha)
    ref = reference_forward(*args)

    # f32 MXU feed: bit-tight check of the im2col / BN-fold / PReLU plumbing.
    fwd_f32 = jax.jit(functools.partial(conv_prelu_forward, compute_dtype=jnp.float32))
    out_f32 = jax.block_until_ready(fwd_f32(*args))
    assert out_f32.shape == (N, out_ch, H, W)
    assert jnp.allclose(out_f32, ref, atol=1e-4, rtol=1e-4)

    # bf16 MXU feed (default perf path on v6e/v7x; f32 accumulation in the MXU).
    fwd_bf16 = jax.jit(functools.partial(conv_prelu_forward, compute_dtype=jnp.bfloat16))
    out_bf16 = jax.block_until_ready(fwd_bf16(*args))
    assert out_bf16.shape == (N, out_ch, H, W)
    assert jnp.allclose(out_bf16, ref, atol=5e-2, rtol=5e-2)

    print("KERNEL_OK")
</pallas_src>

<mosaic_0001>
module attributes {stable_mosaic.version = 11 : i64} {
  func.func @conv_prelu_kernel(%arg0: i32, %arg1: memref<256x128xf32, #tpu.memory_space<vmem>>, %arg2: memref<128x128xf32, #tpu.memory_space<vmem>>, %arg3: memref<1x128xf32, #tpu.memory_space<vmem>>, %arg4: memref<1x128xf32, #tpu.memory_space<vmem>>, %arg5: memref<1xf32, #tpu.memory_space<smem>>, %arg6: memref<256x128xf32, #tpu.memory_space<vmem>>) attributes {dimension_semantics = [#tpu.dimension_semantics<parallel>], iteration_bounds = array<i64: 2>, scalar_prefetch = 0 : i64, scratch_operands = 0 : i64, tpu.core_type = #tpu.core_type<tc>, window_params = [{transform_indices = @transform_0, window_bounds = array<i64: 256, 128>}, {pipeline_mode = #tpu.pipeline_mode<synchronous>, transform_indices = @transform_1, window_bounds = array<i64: 128, 128>}, {pipeline_mode = #tpu.pipeline_mode<synchronous>, transform_indices = @transform_2, window_bounds = array<i64: 1, 128>}, {pipeline_mode = #tpu.pipeline_mode<synchronous>, transform_indices = @transform_3, window_bounds = array<i64: 1, 128>}, {transform_indices = @transform_4, window_bounds = array<i64: 1>}, {transform_indices = @transform_5, window_bounds = array<i64: 256, 128>}]} {
    %c0 = arith.constant 0 : index
    %c0_0 = arith.constant 0 : index
    %0 = vector.load %arg1[%c0, %c0_0] : memref<256x128xf32, #tpu.memory_space<vmem>>, vector<256x128xf32>
    %c0_1 = arith.constant 0 : index
    %c0_2 = arith.constant 0 : index
    %1 = vector.load %arg2[%c0_1, %c0_2] : memref<128x128xf32, #tpu.memory_space<vmem>>, vector<128x128xf32>
    %cst = arith.constant dense<0.000000e+00> : vector<256x128xf32>
    %2 = tpu.matmul %0, %1, %cst {dimension_numbers = #tpu.dot_dimension_numbers<[1], [0], [0], [1], [0, 0, 1, 1], [], []>} : vector<256x128xf32>, vector<128x128xf32>, vector<256x128xf32> -> vector<256x128xf32>
    %c0_3 = arith.constant 0 : index
    %c0_4 = arith.constant 0 : index
    %3 = vector.load %arg3[%c0_3, %c0_4] : memref<1x128xf32, #tpu.memory_space<vmem>>, vector<1x128xf32>
    %4 = vector.broadcast %3 : vector<1x128xf32> to vector<256x128xf32>
    %5 = arith.mulf %2, %4 : vector<256x128xf32>
    %c0_5 = arith.constant 0 : index
    %c0_6 = arith.constant 0 : index
    %6 = vector.load %arg4[%c0_5, %c0_6] : memref<1x128xf32, #tpu.memory_space<vmem>>, vector<1x128xf32>
    %7 = vector.broadcast %6 : vector<1x128xf32> to vector<256x128xf32>
    %8 = arith.addf %5, %7 : vector<256x128xf32>
    %c0_7 = arith.constant 0 : index
    %9 = memref.load %arg5[%c0_7] : memref<1xf32, #tpu.memory_space<smem>>
    %cst_8 = arith.constant 0.000000e+00 : f32
    %10 = vector.broadcast %cst_8 : f32 to vector<256x128xf32>
    %11 = arith.cmpf ogt, %8, %10 : vector<256x128xf32>
    %12 = vector.broadcast %9 : f32 to vector<256x128xf32>
    %13 = arith.mulf %12, %8 : vector<256x128xf32>
    %14 = arith.select %11, %8, %13 : vector<256x128xi1>, vector<256x128xf32>
    %c0_9 = arith.constant 0 : index
    %c0_10 = arith.constant 0 : index
    %15 = vector.load %arg6[%c0_9, %c0_10] : memref<256x128xf32, #tpu.memory_space<vmem>>, vector<256x128xf32>
    tpu.vector_store %arg6[%c0_9, %c0_10], %14 {strides = array<i32>} : memref<256x128xf32, #tpu.memory_space<vmem>>, vector<256x128xf32>,
    return
  }
  func.func @transform_0(%arg0: i32) -> (i32, i32) {
    %c0_i32 = arith.constant 0 : i32
    %c0_i32_0 = arith.constant 0 : i32
    return %arg0, %c0_i32 : i32, i32
  }
  func.func @transform_1(%arg0: i32) -> (i32, i32) {
    %c0_i32 = arith.constant 0 : i32
    %c0_i32_0 = arith.constant 0 : i32
    %c0_i32_1 = arith.constant 0 : i32
    return %c0_i32, %c0_i32_0 : i32, i32
  }
  func.func @transform_2(%arg0: i32) -> (i32, i32) {
    %c0_i32 = arith.constant 0 : i32
    %c0_i32_0 = arith.constant 0 : i32
    %c0_i32_1 = arith.constant 0 : i32
    return %c0_i32, %c0_i32_0 : i32, i32
  }
  func.func @transform_3(%arg0: i32) -> (i32, i32) {
    %c0_i32 = arith.constant 0 : i32
    %c0_i32_0 = arith.constant 0 : i32
    %c0_i32_1 = arith.constant 0 : i32
    return %c0_i32, %c0_i32_0 : i32, i32
  }
  func.func @transform_4(%arg0: i32) -> i32 {
    %c0_i32 = arith.constant 0 : i32
    %c0_i32_0 = arith.constant 0 : i32
    return %c0_i32 : i32
  }
  func.func @transform_5(%arg0: i32) -> (i32, i32) {
    %c0_i32 = arith.constant 0 : i32
    %c0_i32_0 = arith.constant 0 : i32
    return %arg0, %c0_i32 : i32, i32
  }
}

</mosaic_0001>

<bundles_post_ra>
// kernel: conv_prelu_forward.1
= control target key start
LH: loop header
LB: loop body
LE: loop exit
PB: predicated region body
PF: predicated region fallthrough
CT: control target
= control target key end

     0   :  { %s988_s20 = smov 0   ;;  %s1238_s0 = inlined_call_operand.vmem [shape: f32[512,128], index: 0, kind: input, shape index: {}]   ;;  %s1239_s1 = inlined_call_operand.vmem [shape: f32[128,128], index: 1, kind: input, shape index: {}]   ;;  %s1240_s2 = inlined_call_operand.vmem [shape: f32[1,128], index: 2, kind: input, shape index: {}]   ;;  %s1241_s3 = inlined_call_operand.vmem [shape: f32[1,128], index: 3, kind: input, shape index: {}]   ;;  %s1242_s4 = inlined_call_operand.<no memory space> [shape: f32[1], index: 4, kind: input, shape index: {}]   ;;  %s1243_s5 = inlined_call_operand.vmem [shape: f32[512,128], index: 5, kind: output, shape index: {}]  }
   0x1   :  { %10 = sst [smem:[#allocation2]] %s1242_s4 }
   0x2 LB: > { %s766_s21 = sadd.s32 4294967295, %s953_s20   ;;  %p770_p0 = scmp.ge.s32.totalorder %s953_s20, 1  ;;  %s953_s20 = sphi %s988_s20, %s16_s20  }
   0x3   : > { %p189_p1 = scmp.lt.s32.totalorder %s953_s20, 3 }
   0x5   : > { %p190_p2 = pnand %p770_p0, %p189_p1 }
   0x6   : > { %s771_s12 = sshll.u32 (!%p190_p2), %s766_s21, 5  ;;  %s580_s8 = sld [smem:[#allocation2]] (!%p190_p2) }
   0x7   : > { %193 = sbr.rel (%p190_p2) target bundleno = 285 (0x11d), region = 40  ;;  %p218_p3 = scmp.lt.s32.totalorder (!%p190_p2), %s771_s12, 63 }
   0xc   : > { %v276_v0 = vld [vmem:[%s1239_s1 + $0x78] sm:$0xff]  ;;  %v275_v1 = vld [vmem:[%s1239_s1 + $0x70] sm:$0xff]  ;;  %v274_v2 = vld [vmem:[%s1239_s1 + $0x68] sm:$0xff]  ;;  %s1245_s12 = smov (!%p218_p3, %s771_s12), 63  ;;  %v1100_v54 = vstv %s580_s8 }
   0xd   : > { %827 = vmatprep.subr.mxu0 %v276_v0  ;;  %907 = vmatprep.subr.mxu1 %v276_v0  ;;  %v273_v3 = vld [vmem:[%s1239_s1 + $0x60] sm:$0xff]  ;;  %v272_v4 = vld [vmem:[%s1239_s1 + $0x58] sm:$0xff]  ;;  %v271_v5 = vld [vmem:[%s1239_s1 + $0x50] sm:$0xff]  ;;  %s772_s25 = sshll.u32 %s1245_s12, 3 }
   0xe   : > { %828 = vmatpush3.msra.mxu0 %v276_v0  ;;  %923 = vmatpush3.msra.mxu1 %v276_v0  ;;  %v270_v6 = vld [vmem:[%s1239_s1 + $0x48] sm:$0xff]  ;;  %v269_v7 = vld [vmem:[%s1239_s1 + $0x40] sm:$0xff]  ;;  %v268_v8 = vld [vmem:[%s1239_s1 + $0x38] sm:$0xff]  ;;  %s1051_s30 = scalar_lea.vmem %s1238_s0, %s772_s25  ;;  %s1111_s16 = scalar_lea.vmem %s1243_s5, %s772_s25 }
   0xf   : > { %829 = vmatprep.subr.mxu0 %v275_v1  ;;  %908 = vmatprep.subr.mxu1 %v275_v1  ;;  %v267_v9 = vld [vmem:[%s1239_s1 + $0x30] sm:$0xff]  ;;  %v266_v10 = vld [vmem:[%s1239_s1 + $0x28] sm:$0xff]  ;;  %v265_v11 = vld [vmem:[%s1239_s1 + $0x20] sm:$0xff] }
  0x10   : > { %830 = vmatpush3.msra.mxu0 %v275_v1  ;;  %924 = vmatpush3.msra.mxu1 %v275_v1  ;;  %v264_v12 = vld [vmem:[%s1239_s1 + $0x18] sm:$0xff]  ;;  %v263_v13 = vld [vmem:[%s1239_s1 + $0x10] sm:$0xff]  ;;  %v262_v14 = vld [vmem:[%s1239_s1 + $0x8] sm:$0xff] }
  0x11   : > { %831 = vmatprep.subr.mxu0 %v274_v2  ;;  %909 = vmatprep.subr.mxu1 %v274_v2  ;;  %v261_v15 = vld [vmem:[%s1239_s1] sm:$0xff]  ;;  %v230_v18 = vld [vmem:[%s1051_s30 + $0x8] sm:$0xff]  ;;  %v231_v20 = vld [vmem:[%s1051_s30 + $0x10] sm:$0xff] }
  0x12   : > { %832 = vmatpush3.msra.mxu0 %v274_v2  ;;  %925 = vmatpush3.msra.mxu1 %v274_v2  ;;  %v229_v16 = vld [vmem:[%s1051_s30] sm:$0xff]  ;;  %v246_v19 = vld [vmem:[%s1051_s30 + $0x88] sm:$0xff]  ;;  %v247_v21 = vld [vmem:[%s1051_s30 + $0x90] sm:$0xff] }
  0x13   : > { %833 = vmatprep.subr.mxu0 %v273_v3  ;;  %910 = vmatprep.subr.mxu1 %v273_v3  ;;  %v245_v17 = vld [vmem:[%s1051_s30 + $0x80] sm:$0xff]  ;;  %v232_v22 = vld [vmem:[%s1051_s30 + $0x18] sm:$0xff]  ;;  %v234_v26 = vld [vmem:[%s1051_s30 + $0x28] sm:$0xff] }
  0x14   : > { %834 = vmatpush3.msra.mxu0 %v273_v3  ;;  %926 = vmatpush3.msra.mxu1 %v273_v3  ;;  %v248_v23 = vld [vmem:[%s1051_s30 + $0x98] sm:$0xff]  ;;  %v233_v24 = vld [vmem:[%s1051_s30 + $0x20] sm:$0xff]  ;;  %v250_v27 = vld [vmem:[%s1051_s30 + $0xa8] sm:$0xff] }
  0x15   : > { %835 = vmatprep.subr.mxu0 %v272_v4  ;;  %911 = vmatprep.subr.mxu1 %v272_v4  ;;  %v249_v25 = vld [vmem:[%s1051_s30 + $0xa0] sm:$0xff]  ;;  %v235_v28 = vld [vmem:[%s1051_s30 + $0x30] sm:$0xff]  ;;  %v236_v30 = vld [vmem:[%s1051_s30 + $0x38] sm:$0xff] }
  0x16   : > { %836 = vmatpush3.msra.mxu0 %v272_v4  ;;  %927 = vmatpush3.msra.mxu1 %v272_v4  ;;  %v251_v29 = vld [vmem:[%s1051_s30 + $0xb0] sm:$0xff]  ;;  %v252_v31 = vld [vmem:[%s1051_s30 + $0xb8] sm:$0xff]  ;;  %v237_v32 = vld [vmem:[%s1051_s30 + $0x40] sm:$0xff] }
  0x17   : > { %837 = vmatprep.subr.mxu0 %v271_v5  ;;  %912 = vmatprep.subr.mxu1 %v271_v5  ;;  %v253_v33 = vld [vmem:[%s1051_s30 + $0xc0] sm:$0xff]  ;;  %v238_v34 = vld [vmem:[%s1051_s30 + $0x48] sm:$0xff]  ;;  %v239_v36 = vld [vmem:[%s1051_s30 + $0x50] sm:$0xff] }
  0x18   : > { %838 = vmatpush3.msra.mxu0 %v271_v5  ;;  %928 = vmatpush3.msra.mxu1 %v271_v5  ;;  %v254_v35 = vld [vmem:[%s1051_s30 + $0xc8] sm:$0xff]  ;;  %v255_v37 = vld [vmem:[%s1051_s30 + $0xd0] sm:$0xff]  ;;  %v240_v38 = vld [vmem:[%s1051_s30 + $0x58] sm:$0xff] }
  0x19   : > { %839 = vmatprep.subr.mxu0 %v270_v6  ;;  %913 = vmatprep.subr.mxu1 %v270_v6  ;;  %v256_v39 = vld [vmem:[%s1051_s30 + $0xd8] sm:$0xff]  ;;  %v241_v40 = vld [vmem:[%s1051_s30 + $0x60] sm:$0xff]  ;;  %v242_v42 = vld [vmem:[%s1051_s30 + $0x68] sm:$0xff] }
  0x1a   : > { %840 = vmatpush3.msra.mxu0 %v270_v6  ;;  %929 = vmatpush3.msra.mxu1 %v270_v6  ;;  %v257_v41 = vld [vmem:[%s1051_s30 + $0xe0] sm:$0xff]  ;;  %v258_v43 = vld [vmem:[%s1051_s30 + $0xe8] sm:$0xff]  ;;  %v243_v44 = vld [vmem:[%s1051_s30 + $0x70] sm:$0xff] }
  0x1b   : > { %841 = vmatprep.subr.mxu0 %v269_v7  ;;  %914 = vmatprep.subr.mxu1 %v269_v7  ;;  %v259_v45 = vld [vmem:[%s1051_s30 + $0xf0] sm:$0xff]  ;;  %v244_v46 = vld [vmem:[%s1051_s30 + $0x78] sm:$0xff]  ;;  %v1091_v48 = vld [vmem:[%s1240_s2] ss:$0 sm:$0xff] }
  0x1c   : > { %842 = vmatpush3.msra.mxu0 %v269_v7  ;;  %930 = vmatpush3.msra.mxu1 %v269_v7  ;;  %v260_v47 = vld [vmem:[%s1051_s30 + $0xf8] sm:$0xff]  ;;  %v1096_v50 = vld [vmem:[%s1241_s3] ss:$0 sm:$0xff] }
  0x1d   : > { %843 = vmatprep.subr.mxu0 %v268_v8  ;;  %915 = vmatprep.subr.mxu1 %v268_v8 }
  0x1e   : > { %844 = vmatpush3.msra.mxu0 %v268_v8  ;;  %931 = vmatpush3.msra.mxu1 %v268_v8 }
  0x1f   : > { %845 = vmatprep.subr.mxu0 %v267_v9  ;;  %916 = vmatprep.subr.mxu1 %v267_v9 }
  0x20   : > { %846 = vmatpush3.msra.mxu0 %v267_v9  ;;  %932 = vmatpush3.msra.mxu1 %v267_v9 }
  0x21   : > { %847 = vmatprep.subr.mxu0 %v266_v10  ;;  %917 = vmatprep.subr.mxu1 %v266_v10 }
  0x22   : > { %848 = vmatpush3.msra.mxu0 %v266_v10  ;;  %933 = vmatpush3.msra.mxu1 %v266_v10 }
  0x23   : > { %849 = vmatprep.subr.mxu0 %v265_v11  ;;  %918 = vmatprep.subr.mxu1 %v265_v11 }
  0x24   : > { %850 = vmatpush3.msra.mxu0 %v265_v11  ;;  %934 = vmatpush3.msra.mxu1 %v265_v11 }
  0x25   : > { %851 = vmatprep.subr.mxu0 %v264_v12  ;;  %919 = vmatprep.subr.mxu1 %v264_v12 }
  0x26   : > { %852 = vmatpush3.msra.mxu0 %v264_v12  ;;  %935 = vmatpush3.msra.mxu1 %v264_v12 }
  0x27   : > { %853 = vmatprep.subr.mxu0 %v263_v13  ;;  %920 = vmatprep.subr.mxu1 %v263_v13 }
  0x28   : > { %854 = vmatpush3.msra.mxu0 %v263_v13  ;;  %936 = vmatpush3.msra.mxu1 %v263_v13 }
  0x29   : > { %855 = vmatprep.subr.mxu0 %v262_v14  ;;  %921 = vmatprep.subr.mxu1 %v262_v14 }
  0x2a   : > { %856 = vmatpush3.msra.mxu0 %v262_v14  ;;  %937 = vmatpush3.msra.mxu1 %v262_v14 }
  0x2b   : > { %857 = vmatprep.subr.mxu0 %v261_v15  ;;  %922 = vmatprep.subr.mxu1 %v261_v15 }
  0x2c   : > { %858 = vmatpush3.msra.mxu0 %v261_v15  ;;  %938 = vmatpush3.msra.mxu1 %v261_v15 }
  0x2d   : > { %859 = vmatprep.mubr.f32.mxu0 %v229_v16  ;;  %883 = vmatprep.mubr.f32.mxu1 %v245_v17 }
  0x2e   : > { %860 = vmatmul.mubr.f32.vlgmr.msra.gmra.mxu0 %v230_v18  ;;  %884 = vmatmul.mubr.f32.vlgmr.msra.gmra.mxu1 %v246_v19 }
  0x2f   : > { %862 = vmatprep.mubr.f32.mxu0 %v231_v20  ;;  %886 = vmatprep.mubr.f32.mxu1 %v247_v21 }
  0x32   : > { %863 = vmatmul.mubr.f32.gmra.mxu0 %v232_v22  ;;  %887 = vmatmul.mubr.f32.gmra.mxu1 %v248_v23 }
  0x33   : > { %865 = vmatprep.mubr.f32.mxu0 %v233_v24  ;;  %889 = vmatprep.mubr.f32.mxu1 %v249_v25 }
  0x36   : > { %866 = vmatmul.mubr.f32.gmra.mxu0 %v234_v26  ;;  %890 = vmatmul.mubr.f32.gmra.mxu1 %v250_v27 }
  0x37   : > { %868 = vmatprep.mubr.f32.mxu0 %v235_v28  ;;  %892 = vmatprep.mubr.f32.mxu1 %v251_v29 }
  0x3a   : > { %869 = vmatmul.mubr.f32.gmra.mxu0 %v236_v30  ;;  %893 = vmatmul.mubr.f32.gmra.mxu1 %v252_v31 }
  0x3b   : > { %871 = vmatprep.mubr.f32.mxu0 %v237_v32  ;;  %895 = vmatprep.mubr.f32.mxu1 %v253_v33 }
  0x3e   : > { %872 = vmatmul.mubr.f32.gmra.mxu0 %v238_v34  ;;  %896 = vmatmul.mubr.f32.gmra.mxu1 %v254_v35 }
  0x3f   : > { %874 = vmatprep.mubr.f32.mxu0 %v239_v36  ;;  %898 = vmatprep.mubr.f32.mxu1 %v255_v37 }
  0x42   : > { %875 = vmatmul.mubr.f32.gmra.mxu0 %v240_v38  ;;  %899 = vmatmul.mubr.f32.gmra.mxu1 %v256_v39 }
  0x43   : > { %877 = vmatprep.mubr.f32.mxu0 %v241_v40  ;;  %901 = vmatprep.mubr.f32.mxu1 %v257_v41 }
  0x46   : > { %878 = vmatmul.mubr.f32.gmra.mxu0 %v242_v42  ;;  %902 = vmatmul.mubr.f32.gmra.mxu1 %v258_v43 }
  0x47   : > { %880 = vmatprep.mubr.f32.mxu0 %v243_v44  ;;  %904 = vmatprep.mubr.f32.mxu1 %v259_v45 }
  0x4a   : > { %881 = vmatmul.mubr.f32.gmra.mxu0 %v244_v46  ;;  %905 = vmatmul.mubr.f32.gmra.mxu1 %v260_v47 }
  0xee   : > { %v861_v49 = vpop.f32.mrf.mxu0  ;;  %v885_v51 = vpop.f32.mrf.mxu1 }
  0xef   : > { %v510_v52 = vmul.f32 %v861_v49, %v1091_v48  ;;  %v526_v53 = vmul.f32 %v885_v51, %v1091_v48 }
  0xf0   : > { %v343_v55 = vpop.f32.mrf.mxu0  ;;  %v423_v56 = vpop.f32.mrf.mxu1 }
  0xf1   : > { %v549_v57 = vadd.f32 %v1096_v50, %v510_v52  ;;  %v565_v58 = vadd.f32 %v1096_v50, %v526_v53  ;;  %v509_v59 = vmul.f32 %v1091_v48, %v343_v55  ;;  %v525_v60 = vmul.f32 %v1091_v48, %v423_v56 }
  0xf2   : > { %v864_v61 = vpop.f32.mrf.mxu0  ;;  %v888_v62 = vpop.f32.mrf.mxu1 }
  0xf3   : > { %vm582_vm0 = vcmp.gt.f32.partialorder %v549_v57, 0.0  ;;  %v615_v63 = vmul.f32 %v1100_v54, %v549_v57  ;;  %vm598_vm1 = vcmp.gt.f32.partialorder %v565_v58, 0.0  ;;  %v631_v0 = vmul.f32 %v1100_v54, %v565_v58 }
  0xf4   : > { %v548_v1 = vadd.f32 %v1096_v50, %v509_v59  ;;  %v564_v2 = vadd.f32 %v1096_v50, %v525_v60  ;;  %v512_v3 = vmul.f32 %v864_v61, %v1091_v48  ;;  %v528_v4 = vmul.f32 %v888_v62, %v1091_v48  ;;  %v353_v5 = vpop.f32.mrf.mxu0  ;;  %v433_v6 = vpop.f32.mrf.mxu1 }
  0xf5   : > { %v647_v7 = vsel %vm582_vm0, %v549_v57, %v615_v63  ;;  %v663_v8 = vsel %vm598_vm1, %v565_v58, %v631_v0  ;;  %v511_v9 = vmul.f32 %v1091_v48, %v353_v5  ;;  %v527_v10 = vmul.f32 %v1091_v48, %v433_v6 }
  0xf6   : > { %679 = vst [vmem:[%s1111_s16 + $0x8] sm:$0xff] %v647_v7  ;;  %695 = vst [vmem:[%s1111_s16 + $0x88] sm:$0xff] %v663_v8  ;;  %vm581_vm2 = vcmp.gt.f32.partialorder %v548_v1, 0.0  ;;  %v614_v11 = vmul.f32 %v1100_v54, %v548_v1  ;;  %vm597_vm3 = vcmp.gt.f32.partialorder %v564_v2, 0.0  ;;  %v630_v12 = vmul.f32 %v1100_v54, %v564_v2  ;;  %v867_v13 = vpop.f32.mrf.mxu0  ;;  %v891_v14 = vpop.f32.mrf.mxu1 }
  0xf7   : > { %v551_v15 = vadd.f32 %v1096_v50, %v512_v3  ;;  %v567_v16 = vadd.f32 %v1096_v50, %v528_v4  ;;  %v550_v17 = vadd.f32 %v1096_v50, %v511_v9  ;;  %v566_v18 = vadd.f32 %v1096_v50, %v527_v10 }
  0xf8   : > { %v646_v19 = vsel %vm581_vm2, %v548_v1, %v614_v11  ;;  %v662_v20 = vsel %vm597_vm3, %v564_v2, %v630_v12  ;;  %v514_v21 = vmul.f32 %v867_v13, %v1091_v48  ;;  %v530_v22 = vmul.f32 %v891_v14, %v1091_v48  ;;  %v363_v23 = vpop.f32.mrf.mxu0  ;;  %v443_v24 = vpop.f32.mrf.mxu1 }
  0xf9   : > { %678 = vst [vmem:[%s1111_s16] sm:$0xff] %v646_v19  ;;  %694 = vst [vmem:[%s1111_s16 + $0x80] sm:$0xff] %v662_v20  ;;  %vm584_vm4 = vcmp.gt.f32.partialorder %v551_v15, 0.0  ;;  %v617_v25 = vmul.f32 %v1100_v54, %v551_v15  ;;  %vm600_vm5 = vcmp.gt.f32.partialorder %v567_v16, 0.0  ;;  %v633_v26 = vmul.f32 %v1100_v54, %v567_v16 }
  0xfa   : > { %vm583_vm6 = vcmp.gt.f32.partialorder %v550_v17, 0.0  ;;  %v616_v27 = vmul.f32 %v1100_v54, %v550_v17  ;;  %vm599_vm7 = vcmp.gt.f32.partialorder %v566_v18, 0.0  ;;  %v632_v28 = vmul.f32 %v1100_v54, %v566_v18  ;;  %v870_v29 = vpop.f32.mrf.mxu0  ;;  %v894_v30 = vpop.f32.mrf.mxu1 }
  0xfb   : > { %v649_v31 = vsel %vm584_vm4, %v551_v15, %v617_v25  ;;  %v665_v32 = vsel %vm600_vm5, %v567_v16, %v633_v26  ;;  %v553_v33 = vadd.f32 %v1096_v50, %v514_v21  ;;  %v569_v34 = vadd.f32 %v1096_v50, %v530_v22 }
  0xfc   : > { %681 = vst [vmem:[%s1111_s16 + $0x18] sm:$0xff] %v649_v31  ;;  %697 = vst [vmem:[%s1111_s16 + $0x98] sm:$0xff] %v665_v32  ;;  %v648_v35 = vsel %vm583_vm6, %v550_v17, %v616_v27  ;;  %v664_v36 = vsel %vm599_vm7, %v566_v18, %v632_v28  ;;  %v513_v37 = vmul.f32 %v1091_v48, %v363_v23  ;;  %v373_v39 = vpop.f32.mrf.mxu0  ;;  %v453_v40 = vpop.f32.mrf.mxu1 }
  0xfd   : > { %v529_v38 = vmul.f32 %v1091_v48, %v443_v24  ;;  %680 = vst [vmem:[%s1111_s16 + $0x10] sm:$0xff] %v648_v35  ;;  %696 = vst [vmem:[%s1111_s16 + $0x90] sm:$0xff] %v664_v36  ;;  %vm586_vm8 = vcmp.gt.f32.partialorder %v553_v33, 0.0  ;;  %v619_v41 = vmul.f32 %v1100_v54, %v553_v33  ;;  %vm602_vm9 = vcmp.gt.f32.partialorder %v569_v34, 0.0 }
  0xfe   : > { %v635_v42 = vmul.f32 %v1100_v54, %v569_v34  ;;  %v552_v43 = vadd.f32 %v1096_v50, %v513_v37  ;;  %v516_v45 = vmul.f32 %v870_v29, %v1091_v48  ;;  %v532_v46 = vmul.f32 %v894_v30, %v1091_v48  ;;  %v873_v47 = vpop.f32.mrf.mxu0  ;;  %v897_v49 = vpop.f32.mrf.mxu1 }
  0xff   : > { %v568_v44 = vadd.f32 %v1096_v50, %v529_v38  ;;  %v651_v51 = vsel %vm586_vm8, %v553_v33, %v619_v41  ;;  %v515_v53 = vmul.f32 %v1091_v48, %v373_v39  ;;  %v531_v55 = vmul.f32 %v1091_v48, %v453_v40 }
 0x100   : > { %v667_v52 = vsel %vm602_vm9, %v569_v34, %v635_v42  ;;  %683 = vst [vmem:[%s1111_s16 + $0x28] sm:$0xff] %v651_v51  ;;  %vm585_vm10 = vcmp.gt.f32.partialorder %v552_v43, 0.0  ;;  %v618_v56 = vmul.f32 %v1100_v54, %v552_v43  ;;  %v383_v58 = vpop.f32.mrf.mxu0  ;;  %v463_v59 = vpop.f32.mrf.mxu1  ;;  %v555_v60 = vadd.f32 %v1096_v50, %v516_v45 }
 0x101   : > { %699 = vst [vmem:[%s1111_s16 + $0xa8] sm:$0xff] %v667_v52  ;;  %vm601_vm11 = vcmp.gt.f32.partialorder %v568_v44, 0.0  ;;  %v634_v57 = vmul.f32 %v1100_v54, %v568_v44  ;;  %v571_v61 = vadd.f32 %v1096_v50, %v532_v46  ;;  %v554_v62 = vadd.f32 %v1096_v50, %v515_v53 }
 0x102   : > { %v570_v63 = vadd.f32 %v1096_v50, %v531_v55  ;;  %v650_v0 = vsel %vm585_vm10, %v552_v43, %v618_v56  ;;  %v518_v2 = vmul.f32 %v873_v47, %v1091_v48  ;;  %v534_v3 = vmul.f32 %v897_v49, %v1091_v48  ;;  %v876_v4 = vpop.f32.mrf.mxu0  ;;  %v900_v5 = vpop.f32.mrf.mxu1 }
 0x103   : > { %v666_v1 = vsel %vm601_vm11, %v568_v44, %v634_v57  ;;  %682 = vst [vmem:[%s1111_s16 + $0x20] sm:$0xff] %v650_v0  ;;  %vm588_vm12 = vcmp.gt.f32.partialorder %v555_v60, 0.0  ;;  %v621_v6 = vmul.f32 %v1100_v54, %v555_v60  ;;  %vm604_vm13 = vcmp.gt.f32.partialorder %v571_v61, 0.0 }
 0x104   : > { %698 = vst [vmem:[%s1111_s16 + $0xa0] sm:$0xff] %v666_v1  ;;  %v637_v7 = vmul.f32 %v1100_v54, %v571_v61  ;;  %vm587_vm14 = vcmp.gt.f32.partialorder %v554_v62, 0.0  ;;  %v620_v8 = vmul.f32 %v1100_v54, %v554_v62  ;;  %vm603_vm15 = vcmp.gt.f32.partialorder %v570_v63, 0.0  ;;  %v393_v10 = vpop.f32.mrf.mxu0  ;;  %v473_v11 = vpop.f32.mrf.mxu1 }
 0x105   : > { %v636_v9 = vmul.f32 %v1100_v54, %v570_v63  ;;  %v653_v12 = vsel %vm588_vm12, %v555_v60, %v621_v6  ;;  %v557_v14 = vadd.f32 %v1096_v50, %v518_v2  ;;  %v573_v15 = vadd.f32 %v1096_v50, %v534_v3 }
 0x106   : > { %v669_v13 = vsel %vm604_vm13, %v571_v61, %v637_v7  ;;  %685 = vst [vmem:[%s1111_s16 + $0x38] sm:$0xff] %v653_v12  ;;  %v652_v16 = vsel %vm587_vm14, %v554_v62, %v620_v8  ;;  %v517_v18 = vmul.f32 %v1091_v48, %v383_v58  ;;  %v533_v19 = vmul.f32 %v1091_v48, %v463_v59  ;;  %v879_v20 = vpop.f32.mrf.mxu0  ;;  %v903_v21 = vpop.f32.mrf.mxu1 }
 0x107   : > { %701 = vst [vmem:[%s1111_s16 + $0xb8] sm:$0xff] %v669_v13  ;;  %v668_v17 = vsel %vm603_vm15, %v570_v63, %v636_v9  ;;  %684 = vst [vmem:[%s1111_s16 + $0x30] sm:$0xff] %v652_v16  ;;  %vm590_vm0 = vcmp.gt.f32.partialorder %v557_v14, 0.0  ;;  %v623_v22 = vmul.f32 %v1100_v54, %v557_v14  ;;  %vm606_vm1 = vcmp.gt.f32.partialorder %v573_v15, 0.0 }
 0x108   : > { %700 = vst [vmem:[%s1111_s16 + $0xb0] sm:$0xff] %v668_v17  ;;  %v639_v23 = vmul.f32 %v1100_v54, %v573_v15  ;;  %v556_v24 = vadd.f32 %v1096_v50, %v517_v18  ;;  %v572_v25 = vadd.f32 %v1096_v50, %v533_v19  ;;  %v520_v26 = vmul.f32 %v876_v4, %v1091_v48  ;;  %v403_v28 = vpop.f32.mrf.mxu0  ;;  %v483_v29 = vpop.f32.mrf.mxu1 }
 0x109   : > { %v536_v27 = vmul.f32 %v900_v5, %v1091_v48  ;;  %v655_v30 = vsel %vm590_vm0, %v557_v14, %v623_v22  ;;  %v519_v32 = vmul.f32 %v1091_v48, %v393_v10  ;;  %v535_v33 = vmul.f32 %v1091_v48, %v473_v11 }
 0x10a   : > { %v671_v31 = vsel %vm606_vm1, %v573_v15, %v639_v23  ;;  %687 = vst [vmem:[%s1111_s16 + $0x48] sm:$0xff] %v655_v30  ;;  %vm589_vm2 = vcmp.gt.f32.partialorder %v556_v24, 0.0  ;;  %v622_v34 = vmul.f32 %v1100_v54, %v556_v24  ;;  %vm605_vm3 = vcmp.gt.f32.partialorder %v572_v25, 0.0  ;;  %v882_v44 = vpop.f32.mrf.mxu0  ;;  %v906_v45 = vpop.f32.mrf.mxu1 }
 0x10b   : > { %703 = vst [vmem:[%s1111_s16 + $0xc8] sm:$0xff] %v671_v31  ;;  %v638_v35 = vmul.f32 %v1100_v54, %v572_v25  ;;  %v559_v36 = vadd.f32 %v1096_v50, %v520_v26  ;;  %v575_v37 = vadd.f32 %v1096_v50, %v536_v27  ;;  %v558_v38 = vadd.f32 %v1096_v50, %v519_v32 }
 0x10c   : > { %v574_v39 = vadd.f32 %v1096_v50, %v535_v33  ;;  %v654_v40 = vsel %vm589_vm2, %v556_v24, %v622_v34  ;;  %v522_v42 = vmul.f32 %v879_v20, %v1091_v48  ;;  %v538_v43 = vmul.f32 %v903_v21, %v1091_v48  ;;  %v413_v61 = vpop.f32.mrf.mxu0  ;;  %v493_v62 = vpop.f32.mrf.mxu1 }
 0x10d   : > { %v670_v41 = vsel %vm605_vm3, %v572_v25, %v638_v35  ;;  %686 = vst [vmem:[%s1111_s16 + $0x40] sm:$0xff] %v654_v40  ;;  %vm592_vm4 = vcmp.gt.f32.partialorder %v559_v36, 0.0  ;;  %v625_v46 = vmul.f32 %v1100_v54, %v559_v36  ;;  %vm608_vm5 = vcmp.gt.f32.partialorder %v575_v37, 0.0 }
 0x10e   : > { %702 = vst [vmem:[%s1111_s16 + $0xc0] sm:$0xff] %v670_v41  ;;  %v641_v47 = vmul.f32 %v1100_v54, %v575_v37  ;;  %vm591_vm6 = vcmp.gt.f32.partialorder %v558_v38, 0.0  ;;  %v624_v49 = vmul.f32 %v1100_v54, %v558_v38  ;;  %vm607_vm7 = vcmp.gt.f32.partialorder %v574_v39, 0.0 }
 0x10f   : > { %v640_v51 = vmul.f32 %v1100_v54, %v574_v39  ;;  %v657_v52 = vsel %vm592_vm4, %v559_v36, %v625_v46  ;;  %v561_v55 = vadd.f32 %v1096_v50, %v522_v42  ;;  %v577_v56 = vadd.f32 %v1096_v50, %v538_v43 }
 0x110   : > { %v673_v53 = vsel %vm608_vm5, %v575_v37, %v641_v47  ;;  %689 = vst [vmem:[%s1111_s16 + $0x58] sm:$0xff] %v657_v52  ;;  %v656_v57 = vsel %vm591_vm6, %v558_v38, %v624_v49  ;;  %v521_v59 = vmul.f32 %v1091_v48, %v403_v28  ;;  %v537_v60 = vmul.f32 %v1091_v48, %v483_v29 }
 0x111   : > { %705 = vst [vmem:[%s1111_s16 + $0xd8] sm:$0xff] %v673_v53  ;;  %v672_v58 = vsel %vm607_vm7, %v574_v39, %v640_v51  ;;  %688 = vst [vmem:[%s1111_s16 + $0x50] sm:$0xff] %v656_v57  ;;  %vm594_vm8 = vcmp.gt.f32.partialorder %v561_v55, 0.0  ;;  %v627_v63 = vmul.f32 %v1100_v54, %v561_v55  ;;  %vm610_vm9 = vcmp.gt.f32.partialorder %v577_v56, 0.0 }
 0x112   : > { %704 = vst [vmem:[%s1111_s16 + $0xd0] sm:$0xff] %v672_v58  ;;  %v643_v0 = vmul.f32 %v1100_v54, %v577_v56  ;;  %v560_v1 = vadd.f32 %v1096_v50, %v521_v59  ;;  %v576_v2 = vadd.f32 %v1096_v50, %v537_v60  ;;  %v524_v3 = vmul.f32 %v882_v44, %v1091_v48 }
 0x113   : > { %v540_v4 = vmul.f32 %v906_v45, %v1091_v48  ;;  %v659_v5 = vsel %vm594_vm8, %v561_v55, %v627_v63  ;;  %v523_v7 = vmul.f32 %v1091_v48, %v413_v61  ;;  %v539_v8 = vmul.f32 %v1091_v48, %v493_v62 }
 0x114   : > { %v675_v6 = vsel %vm610_vm9, %v577_v56, %v643_v0  ;;  %691 = vst [vmem:[%s1111_s16 + $0x68] sm:$0xff] %v659_v5  ;;  %vm593_vm10 = vcmp.gt.f32.partialorder %v560_v1, 0.0  ;;  %v626_v9 = vmul.f32 %v1100_v54, %v560_v1  ;;  %vm609_vm11 = vcmp.gt.f32.partialorder %v576_v2, 0.0 }
 0x115   : > { %707 = vst [vmem:[%s1111_s16 + $0xe8] sm:$0xff] %v675_v6  ;;  %v642_v10 = vmul.f32 %v1100_v54, %v576_v2  ;;  %v563_v11 = vadd.f32 %v1096_v50, %v524_v3  ;;  %v579_v12 = vadd.f32 %v1096_v50, %v540_v4  ;;  %v562_v13 = vadd.f32 %v1096_v50, %v523_v7 }
 0x116   : > { %v578_v14 = vadd.f32 %v1096_v50, %v539_v8  ;;  %v658_v15 = vsel %vm593_vm10, %v560_v1, %v626_v9 }
 0x117   : > { %v674_v48 = vsel %vm609_vm11, %v576_v2, %v642_v10  ;;  %690 = vst [vmem:[%s1111_s16 + $0x60] sm:$0xff] %v658_v15  ;;  %vm596_vm12 = vcmp.gt.f32.partialorder %v563_v11, 0.0  ;;  %v629_v16 = vmul.f32 %v1100_v54, %v563_v11  ;;  %vm612_vm13 = vcmp.gt.f32.partialorder %v579_v12, 0.0 }
 0x118   : > { %706 = vst [vmem:[%s1111_s16 + $0xe0] sm:$0xff] %v674_v48  ;;  %v645_v17 = vmul.f32 %v1100_v54, %v579_v12  ;;  %vm595_vm14 = vcmp.gt.f32.partialorder %v562_v13, 0.0  ;;  %v628_v18 = vmul.f32 %v1100_v54, %v562_v13  ;;  %vm611_vm15 = vcmp.gt.f32.partialorder %v578_v14, 0.0 }
 0x119   : > { %v644_v19 = vmul.f32 %v1100_v54, %v578_v14  ;;  %v661_v50 = vsel %vm596_vm12, %v563_v11, %v629_v16 }
 0x11a   : > { %v677_v20 = vsel %vm612_vm13, %v579_v12, %v645_v17  ;;  %693 = vst [vmem:[%s1111_s16 + $0x78] sm:$0xff] %v661_v50  ;;  %v660_v21 = vsel %vm595_vm14, %v562_v13, %v628_v18 }
 0x11b   : > { %709 = vst [vmem:[%s1111_s16 + $0xf8] sm:$0xff] %v677_v20  ;;  %v676_v22 = vsel %vm611_vm15, %v578_v14, %v644_v19  ;;  %692 = vst [vmem:[%s1111_s16 + $0x70] sm:$0xff] %v660_v21 }
 0x11c   : > { %708 = vst [vmem:[%s1111_s16 + $0xf0] sm:$0xff] %v676_v22 }
 0x11d PF: > { %s16_s20 = sadd.s32 1, %s953_s20  }
 0x11e   : > { %p13_p4 = scmp.ge.s32.totalorder %s16_s20, 4  }
 0x120   :  { %15 = sbr.rel (!%p13_p4) target bundleno = 2 (0x2), region = 70 }

</bundles_post_ra>
